<compile_context>
chip_gen: v7x
topology: tpu7x:2x2x1
jax: 0.10.0
libtpu: 0.0.40
codegen_flags: <defaults>
</compile_context>

<pallas_src>
import functools

import numpy as np
import jax
import jax.numpy as jnp
from jax.experimental import pallas as pl
from jax.experimental.pallas import tpu as pltpu

NEG_SLOPE = 0.01        # nn.LeakyReLU default negative_slope
BN_EPS = 1e-5           # nn.BatchNorm2d default eps
CHANNELS_OUT = (16, 32, 64)


def _conv2d_size_out(size, K, S):
    return (size - (K - 1) - 1) // S + 1


# --------------------------- wrapper-side im2col -----------------------------

def _im2col_nhwc(x, K, S):
    """x: [N,H,W,C] -> patches [N, OH*OW, K*K*C], feature order (ki, kj, c)."""
    N, H, W, C = x.shape
    OH = _conv2d_size_out(H, K, S)
    OW = _conv2d_size_out(W, K, S)
    cols = []
    for ki in range(K):
        for kj in range(K):
            cols.append(x[:, ki:ki + S * (OH - 1) + 1:S,
                           kj:kj + S * (OW - 1) + 1:S, :])        # [N,OH,OW,C]
    p = jnp.stack(cols, axis=3)                                    # [N,OH,OW,K*K,C]
    return p.reshape(N, OH * OW, K * K * C), OH, OW


# ----------------------------- in-kernel gather -------------------------------

def _gather_patches(act, OW_in, OH_out, OW_out, K, S):
    """act: [OH_in*OW_in, C] (rows = (oh,ow) row-major) ->
    patches [OH_out*OW_out, K*K*C] with feature order (ki, kj, c).

    All indices are Python constants, so this lowers to static unit-stride
    slices + concatenation only (no strided slicing, no reshapes, no selection
    matmuls); intermediates never leave VMEM/vregs."""
    blocks = []
    for ki in range(K):
        for kj in range(K):
            rows = []
            for oh in range(OH_out):
                for ow in range(OW_out):
                    r = (S * oh + ki) * OW_in + (S * ow + kj)
                    rows.append(act[r:r + 1, :])                   # [1, C]
            blocks.append(rows[0] if len(rows) == 1
                          else jnp.concatenate(rows, axis=0))      # [M_out, C]
    return jnp.concatenate(blocks, axis=1)                         # [M_out, K*K*C]


# ------------------------------ Pallas kernel ---------------------------------

def _fused_cnn_kernel(p1_ref, w1_ref, sh1_ref, w2_ref, sh2_ref,
                      w3_ref, sh3_ref, fcw_ref, fcb_ref, o_ref, *, geom):
    """Entire ClassicCNN forward for ONE sample; all activations stay on-chip."""
    OW1, OH2, OW2, OH3, OW3, K, S = geom

    def shift_lrelu(y, sh_ref):
        y = y + sh_ref[...]                      # conv bias + eval BN (scale already in W)
        return jnp.where(y >= 0.0, y, NEG_SLOPE * y)

    # layer 1: single MXU dot, contraction K*K*C_in
    a1 = shift_lrelu(jnp.dot(p1_ref[0], w1_ref[...],
                             preferred_element_type=jnp.float32), sh1_ref)   # [M1,16]

    # layer 2: static-slice im2col -> single dot, contraction K*K*16
    p2 = _gather_patches(a1, OW1, OH2, OW2, K, S).astype(jnp.bfloat16)
    a2 = shift_lrelu(jnp.dot(p2, w2_ref[...],
                             preferred_element_type=jnp.float32), sh2_ref)   # [M2,32]

    # layer 3: contraction K*K*32
    p3 = _gather_patches(a2, OW2, OH3, OW3, K, S).astype(jnp.bfloat16)
    a3 = shift_lrelu(jnp.dot(p3, w3_ref[...],
                             preferred_element_type=jnp.float32), sh3_ref)   # [M3,64]

    # Flatten ((oh,ow,c) order is matched by the fc weight layout) + Linear
    P3 = OH3 * OW3
    flat = a3 if P3 == 1 else jnp.concatenate(
        [a3[p:p + 1, :] for p in range(P3)], axis=1)                         # [1, P3*64]
    out = jnp.dot(flat.astype(jnp.bfloat16), fcw_ref[...],
                  preferred_element_type=jnp.float32) + fcb_ref[...]         # [1, A]
    o_ref[0] = out


# ------------------------------ parameter init --------------------------------

def init_torch_params(key, C, H, W, K, S, num_actions):
    """Random parameters in native PyTorch layouts (eval-mode BN running stats)."""
    channels = [C, *CHANNELS_OUT]
    raw = {}
    for i in range(3):
        key, k1, k2, k3, k4, k5, k6 = jax.random.split(key, 7)
        ic, oc = channels[i], channels[i + 1]
        raw[f"conv{i}_w"] = 0.1 * jax.random.normal(k1, (oc, ic, K, K), jnp.float32)
        raw[f"conv{i}_b"] = 0.1 * jax.random.normal(k2, (oc,), jnp.float32)
        raw[f"bn{i}_gamma"] = 1.0 + 0.1 * jax.random.normal(k3, (oc,), jnp.float32)
        raw[f"bn{i}_beta"] = 0.1 * jax.random.normal(k4, (oc,), jnp.float32)
        raw[f"bn{i}_mean"] = 0.1 * jax.random.normal(k5, (oc,), jnp.float32)
        raw[f"bn{i}_var"] = jnp.abs(jax.random.normal(k6, (oc,), jnp.float32)) + 0.5
    oh, ow = H, W
    for _ in range(3):
        oh, ow = _conv2d_size_out(oh, K, S), _conv2d_size_out(ow, K, S)
    key, k1, k2 = jax.random.split(key, 3)
    raw["fc_w"] = 0.1 * jax.random.normal(
        k1, (num_actions, oh * ow * channels[-1]), jnp.float32)      # torch [out, in]
    raw["fc_b"] = 0.1 * jax.random.normal(k2, (num_actions,), jnp.float32)
    return raw


def fold_params(raw, C, H, W, K, S, num_actions):
    """One-time re-layout: BN scale folded into conv weights (pre-bf16 cast),
    conv weights -> [K*K*C_in, C_out] im2col layout, fc weights permuted so the
    kernel consumes the (oh,ow,c)-ordered conv3 output with no transpose."""
    channels = [C, *CHANNELS_OUT]
    params = {}
    for i in range(3):
        ic, oc = channels[i], channels[i + 1]
        s = raw[f"bn{i}_gamma"] / jnp.sqrt(raw[f"bn{i}_var"] + BN_EPS)
        w_folded = raw[f"conv{i}_w"] * s[:, None, None, None]        # fold BN scale into W
        shift = (raw[f"conv{i}_b"] - raw[f"bn{i}_mean"]) * s + raw[f"bn{i}_beta"]
        params[f"w{i + 1}"] = jnp.transpose(w_folded, (2, 3, 1, 0)) \
            .reshape(K * K * ic, oc).astype(jnp.bfloat16)            # rows = (ki,kj,ic)
        params[f"shift{i + 1}"] = shift[None, :].astype(jnp.float32)
    oh, ow = H, W
    for _ in range(3):
        oh, ow = _conv2d_size_out(oh, K, S), _conv2d_size_out(ow, K, S)
    c3 = channels[-1]
    params["fc_w"] = jnp.transpose(
        raw["fc_w"].reshape(num_actions, c3, oh, ow), (2, 3, 1, 0)
    ).reshape(oh * ow * c3, num_actions).astype(jnp.bfloat16)        # rows = (oh,ow,c)
    params["fc_b"] = raw["fc_b"][None, :].astype(jnp.float32)
    return params


# ---------------------------------- forward -----------------------------------

def classic_cnn_forward(x_nchw, params, K, S, num_actions):
    if x_nchw.ndim < 4:
        x_nchw = x_nchw[None]                                        # unsqueeze(0)
    x = jnp.transpose(x_nchw.astype(jnp.float32), (0, 2, 3, 1))      # NCHW -> NHWC
    N, _, _, C = x.shape

    # Layer-1 im2col: one small fused XLA op on the raw input (see header note).
    patches, OH1, OW1 = _im2col_nhwc(x, K, S)
    patches = patches.astype(jnp.bfloat16)                           # [N, M1, K*K*C]
    M1, F1 = patches.shape[1], patches.shape[2]

    OH2, OW2 = _conv2d_size_out(OH1, K, S), _conv2d_size_out(OW1, K, S)
    OH3, OW3 = _conv2d_size_out(OH2, K, S), _conv2d_size_out(OW2, K, S)
    geom = (OW1, OH2, OW2, OH3, OW3, K, S)

    c1, c2, c3 = CHANNELS_OUT
    A = num_actions

    def const_spec(shape):
        # Whole-array block, same block for every grid step (weights/biases).
        return pl.BlockSpec(shape, lambda n: (0,) * len(shape))

    out = pl.pallas_call(
        functools.partial(_fused_cnn_kernel, geom=geom),
        out_shape=jax.ShapeDtypeStruct((N, 1, A), jnp.float32),
        grid=(N,),                                          # one sample per grid step
        in_specs=[
            pl.BlockSpec((1, M1, F1), lambda n: (n, 0, 0)),          # layer-1 patches
            const_spec((K * K * C, c1)),  const_spec((1, c1)),       # w1, shift1
            const_spec((K * K * c1, c2)), const_spec((1, c2)),       # w2, shift2
            const_spec((K * K * c2, c3)), const_spec((1, c3)),       # w3, shift3
            const_spec((OH3 * OW3 * c3, A)), const_spec((1, A)),     # fc_w, fc_b
        ],
        out_specs=pl.BlockSpec((1, 1, A), lambda n: (n, 0, 0)),
        compiler_params=pltpu.CompilerParams(
            dimension_semantics=("parallel",)),             # megacore split on v7x
    )(patches, params["w1"], params["shift1"], params["w2"], params["shift2"],
      params["w3"], params["shift3"], params["fc_w"], params["fc_b"])
    return out.reshape(N, A)


# ------------------------- pure-JAX float32 reference --------------------------

def reference_forward(x_nchw, raw, K, S):
    if x_nchw.ndim < 4:
        x_nchw = x_nchw[None]
    act = x_nchw.astype(jnp.float32)
    for i in range(3):
        y = jax.lax.conv_general_dilated(
            act, raw[f"conv{i}_w"], window_strides=(S, S), padding="VALID",
            dimension_numbers=("NCHW", "OIHW", "NCHW"),
            precision=jax.lax.Precision.HIGHEST)
        y = y + raw[f"conv{i}_b"][None, :, None, None]
        s = raw[f"bn{i}_gamma"] / jnp.sqrt(raw[f"bn{i}_var"] + BN_EPS)
        y = ((y - raw[f"bn{i}_mean"][None, :, None, None]) * s[None, :, None, None]
             + raw[f"bn{i}_beta"][None, :, None, None])
        act = jnp.where(y >= 0.0, y, NEG_SLOPE * y)
    flat = act.reshape(act.shape[0], -1)                   # NCHW flatten (c, oh, ow)
    return jnp.dot(flat, raw["fc_w"].T,
                   precision=jax.lax.Precision.HIGHEST) + raw["fc_b"][None, :]


# ----------------------------------- main --------------------------------------

if __name__ == "__main__":
    # Small shapes: batch=2, C=4, H=W=16, K=3, S=2, num_actions=4
    B, C, H, W = 2, 4, 16, 16
    K, S, num_actions = 3, 2, 4

    key = jax.random.PRNGKey(0)
    key, pkey, xkey = jax.random.split(key, 3)
    raw = init_torch_params(pkey, C, H, W, K, S, num_actions)
    params = fold_params(raw, C, H, W, K, S, num_actions)
    x = jax.random.normal(xkey, (B, C, H, W), jnp.float32)

    fwd = jax.jit(functools.partial(
        classic_cnn_forward, K=K, S=S, num_actions=num_actions))
    out = jax.block_until_ready(fwd(x, params))
    assert out.shape == (B, num_actions), out.shape

    # Tolerance-checked vs. float32 eval-mode reference (kernel uses bf16 MXU
    # inputs with f32 accumulation).
    ref = np.asarray(reference_forward(x, raw, K, S))
    np.testing.assert_allclose(np.asarray(out), ref, rtol=5e-2, atol=5e-2)
    print("KERNEL_OK")
</pallas_src>

<mosaic_0001>
module attributes {stable_mosaic.version = 11 : i64} {
  func.func @_fused_cnn_kernel(%arg0: i32, %arg1: memref<1x49x36xbf16, #tpu.memory_space<vmem>>, %arg2: memref<36x16xbf16, #tpu.memory_space<vmem>>, %arg3: memref<1x16xf32, #tpu.memory_space<vmem>>, %arg4: memref<144x32xbf16, #tpu.memory_space<vmem>>, %arg5: memref<1x32xf32, #tpu.memory_space<vmem>>, %arg6: memref<288x64xbf16, #tpu.memory_space<vmem>>, %arg7: memref<1x64xf32, #tpu.memory_space<vmem>>, %arg8: memref<64x4xbf16, #tpu.memory_space<vmem>>, %arg9: memref<1x4xf32, #tpu.memory_space<vmem>>, %arg10: memref<1x1x4xf32, #tpu.memory_space<vmem>>) attributes {dimension_semantics = [#tpu.dimension_semantics<parallel>], iteration_bounds = array<i64: 2>, scalar_prefetch = 0 : i64, scratch_operands = 0 : i64, tpu.core_type = #tpu.core_type<tc>, window_params = [{transform_indices = @transform_0, window_bounds = array<i64: 1, 49, 36>}, {pipeline_mode = #tpu.pipeline_mode<synchronous>, transform_indices = @transform_1, window_bounds = array<i64: 36, 16>}, {pipeline_mode = #tpu.pipeline_mode<synchronous>, transform_indices = @transform_2, window_bounds = array<i64: 1, 16>}, {pipeline_mode = #tpu.pipeline_mode<synchronous>, transform_indices = @transform_3, window_bounds = array<i64: 144, 32>}, {pipeline_mode = #tpu.pipeline_mode<synchronous>, transform_indices = @transform_4, window_bounds = array<i64: 1, 32>}, {pipeline_mode = #tpu.pipeline_mode<synchronous>, transform_indices = @transform_5, window_bounds = array<i64: 288, 64>}, {pipeline_mode = #tpu.pipeline_mode<synchronous>, transform_indices = @transform_6, window_bounds = array<i64: 1, 64>}, {pipeline_mode = #tpu.pipeline_mode<synchronous>, transform_indices = @transform_7, window_bounds = array<i64: 64, 4>}, {pipeline_mode = #tpu.pipeline_mode<synchronous>, transform_indices = @transform_8, window_bounds = array<i64: 1, 4>}, {transform_indices = @transform_9, window_bounds = array<i64: 1, 1, 4>}]} {
    %c0 = arith.constant 0 : index
    %c0_0 = arith.constant 0 : index
    %c0_1 = arith.constant 0 : index
    %0 = vector.load %arg1[%c0, %c0_0, %c0_1] : memref<1x49x36xbf16, #tpu.memory_space<vmem>>, vector<1x49x36xbf16>
    %1 = vector.shape_cast %0 : vector<1x49x36xbf16> to vector<49x36xbf16>
    %c0_2 = arith.constant 0 : index
    %c0_3 = arith.constant 0 : index
    %2 = vector.load %arg2[%c0_2, %c0_3] : memref<36x16xbf16, #tpu.memory_space<vmem>>, vector<36x16xbf16>
    %cst = arith.constant dense<0.000000e+00> : vector<49x16xf32>
    %3 = tpu.matmul %1, %2, %cst {dimension_numbers = #tpu.dot_dimension_numbers<[1], [0], [0], [1], [0, 0, 1, 1], [], []>} : vector<49x36xbf16>, vector<36x16xbf16>, vector<49x16xf32> -> vector<49x16xf32>
    %c0_4 = arith.constant 0 : index
    %c0_5 = arith.constant 0 : index
    %4 = vector.load %arg3[%c0_4, %c0_5] : memref<1x16xf32, #tpu.memory_space<vmem>>, vector<1x16xf32>
    %5 = vector.broadcast %4 : vector<1x16xf32> to vector<49x16xf32>
    %6 = arith.addf %3, %5 : vector<49x16xf32>
    %cst_6 = arith.constant 0.000000e+00 : f32
    %7 = vector.broadcast %cst_6 : f32 to vector<49x16xf32>
    %8 = arith.cmpf oge, %6, %7 : vector<49x16xf32>
    %cst_7 = arith.constant 0.00999999977 : f32
    %9 = vector.broadcast %cst_7 : f32 to vector<49x16xf32>
    %10 = arith.mulf %9, %6 : vector<49x16xf32>
    %11 = arith.select %8, %6, %10 : vector<49x16xi1>, vector<49x16xf32>
    %12 = vector.extract_strided_slice %11 {offsets = [0, 0], sizes = [1, 16], strides = [1, 1]} : vector<49x16xf32> to vector<1x16xf32>
    %13 = vector.extract_strided_slice %11 {offsets = [2, 0], sizes = [1, 16], strides = [1, 1]} : vector<49x16xf32> to vector<1x16xf32>
    %14 = vector.extract_strided_slice %11 {offsets = [4, 0], sizes = [1, 16], strides = [1, 1]} : vector<49x16xf32> to vector<1x16xf32>
    %15 = vector.extract_strided_slice %11 {offsets = [14, 0], sizes = [1, 16], strides = [1, 1]} : vector<49x16xf32> to vector<1x16xf32>
    %16 = vector.extract_strided_slice %11 {offsets = [16, 0], sizes = [1, 16], strides = [1, 1]} : vector<49x16xf32> to vector<1x16xf32>
    %17 = vector.extract_strided_slice %11 {offsets = [18, 0], sizes = [1, 16], strides = [1, 1]} : vector<49x16xf32> to vector<1x16xf32>
    %18 = vector.extract_strided_slice %11 {offsets = [28, 0], sizes = [1, 16], strides = [1, 1]} : vector<49x16xf32> to vector<1x16xf32>
    %19 = vector.extract_strided_slice %11 {offsets = [30, 0], sizes = [1, 16], strides = [1, 1]} : vector<49x16xf32> to vector<1x16xf32>
    %20 = vector.extract_strided_slice %11 {offsets = [32, 0], sizes = [1, 16], strides = [1, 1]} : vector<49x16xf32> to vector<1x16xf32>
    %21 = tpu.concatenate %12, %13, %14, %15, %16, %17, %18, %19, %20 in 0 : vector<1x16xf32>, vector<1x16xf32>, vector<1x16xf32>, vector<1x16xf32>, vector<1x16xf32>, vector<1x16xf32>, vector<1x16xf32>, vector<1x16xf32>, vector<1x16xf32> -> vector<9x16xf32>
    %22 = vector.extract_strided_slice %11 {offsets = [1, 0], sizes = [1, 16], strides = [1, 1]} : vector<49x16xf32> to vector<1x16xf32>
    %23 = vector.extract_strided_slice %11 {offsets = [3, 0], sizes = [1, 16], strides = [1, 1]} : vector<49x16xf32> to vector<1x16xf32>
    %24 = vector.extract_strided_slice %11 {offsets = [5, 0], sizes = [1, 16], strides = [1, 1]} : vector<49x16xf32> to vector<1x16xf32>
    %25 = vector.extract_strided_slice %11 {offsets = [15, 0], sizes = [1, 16], strides = [1, 1]} : vector<49x16xf32> to vector<1x16xf32>
    %26 = vector.extract_strided_slice %11 {offsets = [17, 0], sizes = [1, 16], strides = [1, 1]} : vector<49x16xf32> to vector<1x16xf32>
    %27 = vector.extract_strided_slice %11 {offsets = [19, 0], sizes = [1, 16], strides = [1, 1]} : vector<49x16xf32> to vector<1x16xf32>
    %28 = vector.extract_strided_slice %11 {offsets = [29, 0], sizes = [1, 16], strides = [1, 1]} : vector<49x16xf32> to vector<1x16xf32>
    %29 = vector.extract_strided_slice %11 {offsets = [31, 0], sizes = [1, 16], strides = [1, 1]} : vector<49x16xf32> to vector<1x16xf32>
    %30 = vector.extract_strided_slice %11 {offsets = [33, 0], sizes = [1, 16], strides = [1, 1]} : vector<49x16xf32> to vector<1x16xf32>
    %31 = tpu.concatenate %22, %23, %24, %25, %26, %27, %28, %29, %30 in 0 : vector<1x16xf32>, vector<1x16xf32>, vector<1x16xf32>, vector<1x16xf32>, vector<1x16xf32>, vector<1x16xf32>, vector<1x16xf32>, vector<1x16xf32>, vector<1x16xf32> -> vector<9x16xf32>
    %32 = vector.extract_strided_slice %11 {offsets = [2, 0], sizes = [1, 16], strides = [1, 1]} : vector<49x16xf32> to vector<1x16xf32>
    %33 = vector.extract_strided_slice %11 {offsets = [4, 0], sizes = [1, 16], strides = [1, 1]} : vector<49x16xf32> to vector<1x16xf32>
    %34 = vector.extract_strided_slice %11 {offsets = [6, 0], sizes = [1, 16], strides = [1, 1]} : vector<49x16xf32> to vector<1x16xf32>
    %35 = vector.extract_strided_slice %11 {offsets = [16, 0], sizes = [1, 16], strides = [1, 1]} : vector<49x16xf32> to vector<1x16xf32>
    %36 = vector.extract_strided_slice %11 {offsets = [18, 0], sizes = [1, 16], strides = [1, 1]} : vector<49x16xf32> to vector<1x16xf32>
    %37 = vector.extract_strided_slice %11 {offsets = [20, 0], sizes = [1, 16], strides = [1, 1]} : vector<49x16xf32> to vector<1x16xf32>
    %38 = vector.extract_strided_slice %11 {offsets = [30, 0], sizes = [1, 16], strides = [1, 1]} : vector<49x16xf32> to vector<1x16xf32>
    %39 = vector.extract_strided_slice %11 {offsets = [32, 0], sizes = [1, 16], strides = [1, 1]} : vector<49x16xf32> to vector<1x16xf32>
    %40 = vector.extract_strided_slice %11 {offsets = [34, 0], sizes = [1, 16], strides = [1, 1]} : vector<49x16xf32> to vector<1x16xf32>
    %41 = tpu.concatenate %32, %33, %34, %35, %36, %37, %38, %39, %40 in 0 : vector<1x16xf32>, vector<1x16xf32>, vector<1x16xf32>, vector<1x16xf32>, vector<1x16xf32>, vector<1x16xf32>, vector<1x16xf32>, vector<1x16xf32>, vector<1x16xf32> -> vector<9x16xf32>
    %42 = vector.extract_strided_slice %11 {offsets = [7, 0], sizes = [1, 16], strides = [1, 1]} : vector<49x16xf32> to vector<1x16xf32>
    %43 = vector.extract_strided_slice %11 {offsets = [9, 0], sizes = [1, 16], strides = [1, 1]} : vector<49x16xf32> to vector<1x16xf32>
    %44 = vector.extract_strided_slice %11 {offsets = [11, 0], sizes = [1, 16], strides = [1, 1]} : vector<49x16xf32> to vector<1x16xf32>
    %45 = vector.extract_strided_slice %11 {offsets = [21, 0], sizes = [1, 16], strides = [1, 1]} : vector<49x16xf32> to vector<1x16xf32>
    %46 = vector.extract_strided_slice %11 {offsets = [23, 0], sizes = [1, 16], strides = [1, 1]} : vector<49x16xf32> to vector<1x16xf32>
    %47 = vector.extract_strided_slice %11 {offsets = [25, 0], sizes = [1, 16], strides = [1, 1]} : vector<49x16xf32> to vector<1x16xf32>
    %48 = vector.extract_strided_slice %11 {offsets = [35, 0], sizes = [1, 16], strides = [1, 1]} : vector<49x16xf32> to vector<1x16xf32>
    %49 = vector.extract_strided_slice %11 {offsets = [37, 0], sizes = [1, 16], strides = [1, 1]} : vector<49x16xf32> to vector<1x16xf32>
    %50 = vector.extract_strided_slice %11 {offsets = [39, 0], sizes = [1, 16], strides = [1, 1]} : vector<49x16xf32> to vector<1x16xf32>
    %51 = tpu.concatenate %42, %43, %44, %45, %46, %47, %48, %49, %50 in 0 : vector<1x16xf32>, vector<1x16xf32>, vector<1x16xf32>, vector<1x16xf32>, vector<1x16xf32>, vector<1x16xf32>, vector<1x16xf32>, vector<1x16xf32>, vector<1x16xf32> -> vector<9x16xf32>
    %52 = vector.extract_strided_slice %11 {offsets = [8, 0], sizes = [1, 16], strides = [1, 1]} : vector<49x16xf32> to vector<1x16xf32>
    %53 = vector.extract_strided_slice %11 {offsets = [10, 0], sizes = [1, 16], strides = [1, 1]} : vector<49x16xf32> to vector<1x16xf32>
    %54 = vector.extract_strided_slice %11 {offsets = [12, 0], sizes = [1, 16], strides = [1, 1]} : vector<49x16xf32> to vector<1x16xf32>
    %55 = vector.extract_strided_slice %11 {offsets = [22, 0], sizes = [1, 16], strides = [1, 1]} : vector<49x16xf32> to vector<1x16xf32>
    %56 = vector.extract_strided_slice %11 {offsets = [24, 0], sizes = [1, 16], strides = [1, 1]} : vector<49x16xf32> to vector<1x16xf32>
    %57 = vector.extract_strided_slice %11 {offsets = [26, 0], sizes = [1, 16], strides = [1, 1]} : vector<49x16xf32> to vector<1x16xf32>
    %58 = vector.extract_strided_slice %11 {offsets = [36, 0], sizes = [1, 16], strides = [1, 1]} : vector<49x16xf32> to vector<1x16xf32>
    %59 = vector.extract_strided_slice %11 {offsets = [38, 0], sizes = [1, 16], strides = [1, 1]} : vector<49x16xf32> to vector<1x16xf32>
    %60 = vector.extract_strided_slice %11 {offsets = [40, 0], sizes = [1, 16], strides = [1, 1]} : vector<49x16xf32> to vector<1x16xf32>
    %61 = tpu.concatenate %52, %53, %54, %55, %56, %57, %58, %59, %60 in 0 : vector<1x16xf32>, vector<1x16xf32>, vector<1x16xf32>, vector<1x16xf32>, vector<1x16xf32>, vector<1x16xf32>, vector<1x16xf32>, vector<1x16xf32>, vector<1x16xf32> -> vector<9x16xf32>
    %62 = vector.extract_strided_slice %11 {offsets = [9, 0], sizes = [1, 16], strides = [1, 1]} : vector<49x16xf32> to vector<1x16xf32>
    %63 = vector.extract_strided_slice %11 {offsets = [11, 0], sizes = [1, 16], strides = [1, 1]} : vector<49x16xf32> to vector<1x16xf32>
    %64 = vector.extract_strided_slice %11 {offsets = [13, 0], sizes = [1, 16], strides = [1, 1]} : vector<49x16xf32> to vector<1x16xf32>
    %65 = vector.extract_strided_slice %11 {offsets = [23, 0], sizes = [1, 16], strides = [1, 1]} : vector<49x16xf32> to vector<1x16xf32>
    %66 = vector.extract_strided_slice %11 {offsets = [25, 0], sizes = [1, 16], strides = [1, 1]} : vector<49x16xf32> to vector<1x16xf32>
    %67 = vector.extract_strided_slice %11 {offsets = [27, 0], sizes = [1, 16], strides = [1, 1]} : vector<49x16xf32> to vector<1x16xf32>
    %68 = vector.extract_strided_slice %11 {offsets = [37, 0], sizes = [1, 16], strides = [1, 1]} : vector<49x16xf32> to vector<1x16xf32>
    %69 = vector.extract_strided_slice %11 {offsets = [39, 0], sizes = [1, 16], strides = [1, 1]} : vector<49x16xf32> to vector<1x16xf32>
    %70 = vector.extract_strided_slice %11 {offsets = [41, 0], sizes = [1, 16], strides = [1, 1]} : vector<49x16xf32> to vector<1x16xf32>
    %71 = tpu.concatenate %62, %63, %64, %65, %66, %67, %68, %69, %70 in 0 : vector<1x16xf32>, vector<1x16xf32>, vector<1x16xf32>, vector<1x16xf32>, vector<1x16xf32>, vector<1x16xf32>, vector<1x16xf32>, vector<1x16xf32>, vector<1x16xf32> -> vector<9x16xf32>
    %72 = vector.extract_strided_slice %11 {offsets = [14, 0], sizes = [1, 16], strides = [1, 1]} : vector<49x16xf32> to vector<1x16xf32>
    %73 = vector.extract_strided_slice %11 {offsets = [16, 0], sizes = [1, 16], strides = [1, 1]} : vector<49x16xf32> to vector<1x16xf32>
    %74 = vector.extract_strided_slice %11 {offsets = [18, 0], sizes = [1, 16], strides = [1, 1]} : vector<49x16xf32> to vector<1x16xf32>
    %75 = vector.extract_strided_slice %11 {offsets = [28, 0], sizes = [1, 16], strides = [1, 1]} : vector<49x16xf32> to vector<1x16xf32>
    %76 = vector.extract_strided_slice %11 {offsets = [30, 0], sizes = [1, 16], strides = [1, 1]} : vector<49x16xf32> to vector<1x16xf32>
    %77 = vector.extract_strided_slice %11 {offsets = [32, 0], sizes = [1, 16], strides = [1, 1]} : vector<49x16xf32> to vector<1x16xf32>
    %78 = vector.extract_strided_slice %11 {offsets = [42, 0], sizes = [1, 16], strides = [1, 1]} : vector<49x16xf32> to vector<1x16xf32>
    %79 = vector.extract_strided_slice %11 {offsets = [44, 0], sizes = [1, 16], strides = [1, 1]} : vector<49x16xf32> to vector<1x16xf32>
    %80 = vector.extract_strided_slice %11 {offsets = [46, 0], sizes = [1, 16], strides = [1, 1]} : vector<49x16xf32> to vector<1x16xf32>
    %81 = tpu.concatenate %72, %73, %74, %75, %76, %77, %78, %79, %80 in 0 : vector<1x16xf32>, vector<1x16xf32>, vector<1x16xf32>, vector<1x16xf32>, vector<1x16xf32>, vector<1x16xf32>, vector<1x16xf32>, vector<1x16xf32>, vector<1x16xf32> -> vector<9x16xf32>
    %82 = vector.extract_strided_slice %11 {offsets = [15, 0], sizes = [1, 16], strides = [1, 1]} : vector<49x16xf32> to vector<1x16xf32>
    %83 = vector.extract_strided_slice %11 {offsets = [17, 0], sizes = [1, 16], strides = [1, 1]} : vector<49x16xf32> to vector<1x16xf32>
    %84 = vector.extract_strided_slice %11 {offsets = [19, 0], sizes = [1, 16], strides = [1, 1]} : vector<49x16xf32> to vector<1x16xf32>
    %85 = vector.extract_strided_slice %11 {offsets = [29, 0], sizes = [1, 16], strides = [1, 1]} : vector<49x16xf32> to vector<1x16xf32>
    %86 = vector.extract_strided_slice %11 {offsets = [31, 0], sizes = [1, 16], strides = [1, 1]} : vector<49x16xf32> to vector<1x16xf32>
    %87 = vector.extract_strided_slice %11 {offsets = [33, 0], sizes = [1, 16], strides = [1, 1]} : vector<49x16xf32> to vector<1x16xf32>
    %88 = vector.extract_strided_slice %11 {offsets = [43, 0], sizes = [1, 16], strides = [1, 1]} : vector<49x16xf32> to vector<1x16xf32>
    %89 = vector.extract_strided_slice %11 {offsets = [45, 0], sizes = [1, 16], strides = [1, 1]} : vector<49x16xf32> to vector<1x16xf32>
    %90 = vector.extract_strided_slice %11 {offsets = [47, 0], sizes = [1, 16], strides = [1, 1]} : vector<49x16xf32> to vector<1x16xf32>
    %91 = tpu.concatenate %82, %83, %84, %85, %86, %87, %88, %89, %90 in 0 : vector<1x16xf32>, vector<1x16xf32>, vector<1x16xf32>, vector<1x16xf32>, vector<1x16xf32>, vector<1x16xf32>, vector<1x16xf32>, vector<1x16xf32>, vector<1x16xf32> -> vector<9x16xf32>
    %92 = vector.extract_strided_slice %11 {offsets = [16, 0], sizes = [1, 16], strides = [1, 1]} : vector<49x16xf32> to vector<1x16xf32>
    %93 = vector.extract_strided_slice %11 {offsets = [18, 0], sizes = [1, 16], strides = [1, 1]} : vector<49x16xf32> to vector<1x16xf32>
    %94 = vector.extract_strided_slice %11 {offsets = [20, 0], sizes = [1, 16], strides = [1, 1]} : vector<49x16xf32> to vector<1x16xf32>
    %95 = vector.extract_strided_slice %11 {offsets = [30, 0], sizes = [1, 16], strides = [1, 1]} : vector<49x16xf32> to vector<1x16xf32>
    %96 = vector.extract_strided_slice %11 {offsets = [32, 0], sizes = [1, 16], strides = [1, 1]} : vector<49x16xf32> to vector<1x16xf32>
    %97 = vector.extract_strided_slice %11 {offsets = [34, 0], sizes = [1, 16], strides = [1, 1]} : vector<49x16xf32> to vector<1x16xf32>
    %98 = vector.extract_strided_slice %11 {offsets = [44, 0], sizes = [1, 16], strides = [1, 1]} : vector<49x16xf32> to vector<1x16xf32>
    %99 = vector.extract_strided_slice %11 {offsets = [46, 0], sizes = [1, 16], strides = [1, 1]} : vector<49x16xf32> to vector<1x16xf32>
    %100 = vector.extract_strided_slice %11 {offsets = [48, 0], sizes = [1, 16], strides = [1, 1]} : vector<49x16xf32> to vector<1x16xf32>
    %101 = tpu.concatenate %92, %93, %94, %95, %96, %97, %98, %99, %100 in 0 : vector<1x16xf32>, vector<1x16xf32>, vector<1x16xf32>, vector<1x16xf32>, vector<1x16xf32>, vector<1x16xf32>, vector<1x16xf32>, vector<1x16xf32>, vector<1x16xf32> -> vector<9x16xf32>
    %102 = tpu.concatenate %21, %31, %41, %51, %61, %71, %81, %91, %101 in 1 : vector<9x16xf32>, vector<9x16xf32>, vector<9x16xf32>, vector<9x16xf32>, vector<9x16xf32>, vector<9x16xf32>, vector<9x16xf32>, vector<9x16xf32>, vector<9x16xf32> -> vector<9x144xf32>
    %103 = arith.truncf %102 : vector<9x144xf32> to vector<9x144xbf16>
    %c0_8 = arith.constant 0 : index
    %c0_9 = arith.constant 0 : index
    %104 = vector.load %arg4[%c0_8, %c0_9] : memref<144x32xbf16, #tpu.memory_space<vmem>>, vector<144x32xbf16>
    %cst_10 = arith.constant dense<0.000000e+00> : vector<9x32xf32>
    %105 = tpu.matmul %103, %104, %cst_10 {dimension_numbers = #tpu.dot_dimension_numbers<[1], [0], [0], [1], [0, 0, 1, 1], [], []>} : vector<9x144xbf16>, vector<144x32xbf16>, vector<9x32xf32> -> vector<9x32xf32>
    %c0_11 = arith.constant 0 : index
    %c0_12 = arith.constant 0 : index
    %106 = vector.load %arg5[%c0_11, %c0_12] : memref<1x32xf32, #tpu.memory_space<vmem>>, vector<1x32xf32>
    %107 = vector.broadcast %106 : vector<1x32xf32> to vector<9x32xf32>
    %108 = arith.addf %105, %107 : vector<9x32xf32>
    %cst_13 = arith.constant 0.000000e+00 : f32
    %109 = vector.broadcast %cst_13 : f32 to vector<9x32xf32>
    %110 = arith.cmpf oge, %108, %109 : vector<9x32xf32>
    %cst_14 = arith.constant 0.00999999977 : f32
    %111 = vector.broadcast %cst_14 : f32 to vector<9x32xf32>
    %112 = arith.mulf %111, %108 : vector<9x32xf32>
    %113 = arith.select %110, %108, %112 : vector<9x32xi1>, vector<9x32xf32>
    %114 = vector.extract_strided_slice %113 {offsets = [0, 0], sizes = [1, 32], strides = [1, 1]} : vector<9x32xf32> to vector<1x32xf32>
    %115 = vector.extract_strided_slice %113 {offsets = [1, 0], sizes = [1, 32], strides = [1, 1]} : vector<9x32xf32> to vector<1x32xf32>
    %116 = vector.extract_strided_slice %113 {offsets = [2, 0], sizes = [1, 32], strides = [1, 1]} : vector<9x32xf32> to vector<1x32xf32>
    %117 = vector.extract_strided_slice %113 {offsets = [3, 0], sizes = [1, 32], strides = [1, 1]} : vector<9x32xf32> to vector<1x32xf32>
    %118 = vector.extract_strided_slice %113 {offsets = [4, 0], sizes = [1, 32], strides = [1, 1]} : vector<9x32xf32> to vector<1x32xf32>
    %119 = vector.extract_strided_slice %113 {offsets = [5, 0], sizes = [1, 32], strides = [1, 1]} : vector<9x32xf32> to vector<1x32xf32>
    %120 = vector.extract_strided_slice %113 {offsets = [6, 0], sizes = [1, 32], strides = [1, 1]} : vector<9x32xf32> to vector<1x32xf32>
    %121 = vector.extract_strided_slice %113 {offsets = [7, 0], sizes = [1, 32], strides = [1, 1]} : vector<9x32xf32> to vector<1x32xf32>
    %122 = vector.extract_strided_slice %113 {offsets = [8, 0], sizes = [1, 32], strides = [1, 1]} : vector<9x32xf32> to vector<1x32xf32>
    %123 = tpu.concatenate %114, %115, %116, %117, %118, %119, %120, %121, %122 in 1 : vector<1x32xf32>, vector<1x32xf32>, vector<1x32xf32>, vector<1x32xf32>, vector<1x32xf32>, vector<1x32xf32>, vector<1x32xf32>, vector<1x32xf32>, vector<1x32xf32> -> vector<1x288xf32>
    %124 = arith.truncf %123 : vector<1x288xf32> to vector<1x288xbf16>
    %c0_15 = arith.constant 0 : index
    %c0_16 = arith.constant 0 : index
    %125 = vector.load %arg6[%c0_15, %c0_16] : memref<288x64xbf16, #tpu.memory_space<vmem>>, vector<288x64xbf16>
    %cst_17 = arith.constant dense<0.000000e+00> : vector<1x64xf32>
    %126 = tpu.matmul %124, %125, %cst_17 {dimension_numbers = #tpu.dot_dimension_numbers<[1], [0], [0], [1], [0, 0, 1, 1], [], []>} : vector<1x288xbf16>, vector<288x64xbf16>, vector<1x64xf32> -> vector<1x64xf32>
    %c0_18 = arith.constant 0 : index
    %c0_19 = arith.constant 0 : index
    %127 = vector.load %arg7[%c0_18, %c0_19] : memref<1x64xf32, #tpu.memory_space<vmem>>, vector<1x64xf32>
    %128 = arith.addf %126, %127 : vector<1x64xf32>
    %cst_20 = arith.constant 0.000000e+00 : f32
    %129 = vector.broadcast %cst_20 : f32 to vector<1x64xf32>
    %130 = arith.cmpf oge, %128, %129 : vector<1x64xf32>
    %cst_21 = arith.constant 0.00999999977 : f32
    %131 = vector.broadcast %cst_21 : f32 to vector<1x64xf32>
    %132 = arith.mulf %131, %128 : vector<1x64xf32>
    %133 = arith.select %130, %128, %132 : vector<1x64xi1>, vector<1x64xf32>
    %134 = arith.truncf %133 : vector<1x64xf32> to vector<1x64xbf16>
    %c0_22 = arith.constant 0 : index
    %c0_23 = arith.constant 0 : index
    %135 = vector.load %arg8[%c0_22, %c0_23] : memref<64x4xbf16, #tpu.memory_space<vmem>>, vector<64x4xbf16>
    %cst_24 = arith.constant dense<0.000000e+00> : vector<1x4xf32>
    %136 = tpu.matmul %134, %135, %cst_24 {dimension_numbers = #tpu.dot_dimension_numbers<[1], [0], [0], [1], [0, 0, 1, 1], [], []>} : vector<1x64xbf16>, vector<64x4xbf16>, vector<1x4xf32> -> vector<1x4xf32>
    %c0_25 = arith.constant 0 : index
    %c0_26 = arith.constant 0 : index
    %137 = vector.load %arg9[%c0_25, %c0_26] : memref<1x4xf32, #tpu.memory_space<vmem>>, vector<1x4xf32>
    %138 = arith.addf %136, %137 : vector<1x4xf32>
    %c0_27 = arith.constant 0 : index
    %c0_28 = arith.constant 0 : index
    %c0_29 = arith.constant 0 : index
    %139 = vector.load %arg10[%c0_27, %c0_28, %c0_29] : memref<1x1x4xf32, #tpu.memory_space<vmem>>, vector<1x1x4xf32>
    %140 = vector.shape_cast %139 : vector<1x1x4xf32> to vector<1x4xf32>
    %141 = vector.shape_cast %138 : vector<1x4xf32> to vector<1x1x4xf32>
    tpu.vector_store %arg10[%c0_27, %c0_28, %c0_29], %141 {strides = array<i32>} : memref<1x1x4xf32, #tpu.memory_space<vmem>>, vector<1x1x4xf32>,
    return
  }
  func.func @transform_0(%arg0: i32) -> (i32, i32, i32) {
    %c0_i32 = arith.constant 0 : i32
    %c0_i32_0 = arith.constant 0 : i32
    %c0_i32_1 = arith.constant 0 : i32
    return %arg0, %c0_i32, %c0_i32_0 : i32, i32, i32
  }
  func.func @transform_1(%arg0: i32) -> (i32, i32) {
    %c0_i32 = arith.constant 0 : i32
    %c0_i32_0 = arith.constant 0 : i32
    %c0_i32_1 = arith.constant 0 : i32
    return %c0_i32, %c0_i32_0 : i32, i32
  }
  func.func @transform_2(%arg0: i32) -> (i32, i32) {
    %c0_i32 = arith.constant 0 : i32
    %c0_i32_0 = arith.constant 0 : i32
    %c0_i32_1 = arith.constant 0 : i32
    return %c0_i32, %c0_i32_0 : i32, i32
  }
  func.func @transform_3(%arg0: i32) -> (i32, i32) {
    %c0_i32 = arith.constant 0 : i32
    %c0_i32_0 = arith.constant 0 : i32
    %c0_i32_1 = arith.constant 0 : i32
    return %c0_i32, %c0_i32_0 : i32, i32
  }
  func.func @transform_4(%arg0: i32) -> (i32, i32) {
    %c0_i32 = arith.constant 0 : i32
    %c0_i32_0 = arith.constant 0 : i32
    %c0_i32_1 = arith.constant 0 : i32
    return %c0_i32, %c0_i32_0 : i32, i32
  }
  func.func @transform_5(%arg0: i32) -> (i32, i32) {
    %c0_i32 = arith.constant 0 : i32
    %c0_i32_0 = arith.constant 0 : i32
    %c0_i32_1 = arith.constant 0 : i32
    return %c0_i32, %c0_i32_0 : i32, i32
  }
  func.func @transform_6(%arg0: i32) -> (i32, i32) {
    %c0_i32 = arith.constant 0 : i32
    %c0_i32_0 = arith.constant 0 : i32
    %c0_i32_1 = arith.constant 0 : i32
    return %c0_i32, %c0_i32_0 : i32, i32
  }
  func.func @transform_7(%arg0: i32) -> (i32, i32) {
    %c0_i32 = arith.constant 0 : i32
    %c0_i32_0 = arith.constant 0 : i32
    %c0_i32_1 = arith.constant 0 : i32
    return %c0_i32, %c0_i32_0 : i32, i32
  }
  func.func @transform_8(%arg0: i32) -> (i32, i32) {
    %c0_i32 = arith.constant 0 : i32
    %c0_i32_0 = arith.constant 0 : i32
    %c0_i32_1 = arith.constant 0 : i32
    return %c0_i32, %c0_i32_0 : i32, i32
  }
  func.func @transform_9(%arg0: i32) -> (i32, i32, i32) {
    %c0_i32 = arith.constant 0 : i32
    %c0_i32_0 = arith.constant 0 : i32
    %c0_i32_1 = arith.constant 0 : i32
    return %arg0, %c0_i32, %c0_i32_0 : i32, i32, i32
  }
}

</mosaic_0001>

<bundles_post_ra>
// kernel: classic_cnn_forward.1
= control target key start
LH: loop header
LB: loop body
LE: loop exit
PB: predicated region body
PF: predicated region fallthrough
CT: control target
= control target key end

     0   :  { %14 = vsyncpa [#allocation3], 0  ;;  %s2083_s0 = inlined_call_operand.vmem [shape: bf16[2,49,36], index: 0, kind: input, shape index: {}]   ;;  %s2084_s1 = inlined_call_operand.vmem [shape: bf16[36,16], index: 1, kind: input, shape index: {}]   ;;  %s2085_s2 = inlined_call_operand.vmem [shape: f32[1,16], index: 2, kind: input, shape index: {}]   ;;  %s2086_s3 = inlined_call_operand.vmem [shape: bf16[144,32], index: 3, kind: input, shape index: {}]   ;;  %s2087_s4 = inlined_call_operand.vmem [shape: f32[1,32], index: 4, kind: input, shape index: {}]   ;;  %s2088_s5 = inlined_call_operand.vmem [shape: bf16[288,64], index: 5, kind: input, shape index: {}]   ;;  %s2089_s6 = inlined_call_operand.vmem [shape: f32[1,64], index: 6, kind: input, shape index: {}]   ;;  %s2090_s7 = inlined_call_operand.vmem [shape: bf16[64,4], index: 7, kind: input, shape index: {}]   ;;  %s2091_s8 = inlined_call_operand.vmem [shape: f32[1,4], index: 8, kind: input, shape index: {}]   ;;  %s2092_s9 = inlined_call_operand.hbm [shape: f32[2,1,4], index: 9, kind: output, shape index: {}]  }
   0x1   :  { %16 = vsyncpa [#allocation3 + $0x1], 0  ;;  %s1637_s30 = smov 0   ;;  %s1639_s10 = smov 0  }
   0x2   :  { %s1641_s11 = smov 0   ;;  %s1643_s12 = smov 0  }
   0x3 LB: > { %s1658_s13 = sadd.s32 4294967295, %s1574_s12   ;;  %s1247_s14 = sadd.s32 4294967294, %s1574_s12   ;;  %s1574_s12 = sphi %s1643_s12, %s2100_s12   ;;  %s1570_s11 = sphi %s1641_s11, %s2099_s11   ;;  %s1566_s10 = sphi %s1639_s10, %s2098_s10   ;;  %s1562_s30 = sphi %s1637_s30, %s2097_s30  }
   0x4   : > { %s1662_s15 = sadd.s32 1, %s1574_s12   ;;  %s223_s16 = sadd.s32 1, %s1570_s11 }
   0x5   : > { %s220_s17 = ssub.s32 %s1574_s12, %s1662_s15  ;;  %p233_p0 = scmp.ne.s32.totalorder %s1570_s11, %s1566_s10 }
   0x6   : > { %p221_p1 = scmp.eq.s32.totalorder %s220_s17, 0  ;;  %p234_p2 = scmp.eq.s32.totalorder %s1658_s13, 1 }
   0x7   : > { %p239_p3 = scmp.ne.s32.totalorder %s1566_s10, %s1562_s30  ;;  %p240_p4 = scmp.eq.s32.totalorder %s1247_s14, 1 }
   0x8   : > { %s1673_s18 = scalar_select %p221_p1, %s1570_s11, %s223_s16  }
   0x9   : > { %p1675_p5 = por %p234_p2, %p233_p0  ;;  %p1679_p6 = por %p240_p4, %p239_p3 }
   0xa   : > { %p1250_p7 = scmp.ge.s32.totalorder %s1574_s12, 1  ;;  %p290_p8 = scmp.lt.s32.totalorder %s1574_s12, 3 }
   0xc   : > { %p291_p9 = pnand %p1250_p7, %p290_p8 }
   0xd   : > { %v1474_v0 = vld [vmem:[%s2084_s1] sm:$0xff] (!%p291_p9)   ;;  %v1475_v1 = vld [vmem:[%s2084_s1 + $0x8] sm:$0xff] (!%p291_p9)   ;;  %p325_p10 = scmp.lt.s32.totalorder (!%p291_p9), %s1658_s13, 1  ;;  %v1476_v2 = vld [vmem:[%s2084_s1 + $0x10] ss:$0 sps:$4 sm:$0x33] (!%p291_p9)  }
   0xe   : > { %294 = sbr.rel (%p291_p9) target bundleno = 1199 (0x4af), region = 56  ;;  %1339 = vmatprep.subr.bf16.mxu1 (!%p291_p9), %v1474_v0  ;;  %vm396_vm0 = vcmask (!%p291_p9), 1041408   ;;  %vm383_vm1 = vcmask (!%p291_p9), 293888   ;;  %v1481_v8 = vld [vmem:[%s2086_s3] sm:$0xff] (!%p291_p9)   ;;  %v1576_v9 = vmov (!%p291_p9), 0   ;;  %v1482_v10 = vld [vmem:[%s2086_s3 + $0x8] sm:$0xff] (!%p291_p9)  }
   0xf   : > { %1340 = vmatpush3.bf16.msra.mxu1 (!%p291_p9), %v1474_v0  ;;  %v398_v3 = vsel (!%p291_p9), %vm396_vm0, %v1476_v2, 0  ;;  %v1483_v11 = vld [vmem:[%s2086_s3 + $0x10] sm:$0xff] (!%p291_p9)   ;;  %v1484_v12 = vld [vmem:[%s2086_s3 + $0x18] sm:$0xff] (!%p291_p9)   ;;  %v1485_v13 = vld [vmem:[%s2086_s3 + $0x20] sm:$0xff] (!%p291_p9)   ;;  %vm503_vm2 = vcmask (!%p291_p9), 1040384   ;;  %vm506_vm3 = vcmask (!%p291_p9), 1042432  }
  0x10   : > { %1341 = vmatprep.subr.bf16.mxu1 (!%p291_p9), %v1475_v1  ;;  %v1252_v14 = vld [vmem:[%s2085_s2] ss:$0 sm:$0xff] (!%p291_p9)  ;;  %vm508_vm5 = vcmask (!%p291_p9), 1043456   ;;  %vm510_vm7 = vcmask (!%p291_p9), 1044480   ;;  %vm512_vm9 = vcmask (!%p291_p9), 1045504   ;;  %vm514_vm11 = vcmask (!%p291_p9), 1046528  }
  0x11   : > { %v1486_v60 = vld [vmem:[%s2086_s3 + $0x28] sm:$0xff] (!%p291_p9)   ;;  %vm681_vm15 = vcmask (!%p291_p9), 130048   ;;  %s1577_s22 = smov (!%p291_p9), 16   ;;  %s1578_s25 = smov (!%p291_p9), 48  }
  0x12   : > { %s1581_s17 = smov (!%p291_p9), 80   ;;  %s2093_s21 = smov (!%p291_p9), 96  }
  0x13   : > { %1342 = vmatpush3.bf16.msra.mxu1 (!%p291_p9), %v1475_v1  ;;  %s1586_s29 = smov (!%p291_p9), [#allocation2]  }
  0x14   : > { %1373 = vmatprep.subr.msk.bf16.mxu1 (!%p291_p9), %vm396_vm0, %v1476_v2  ;;  %s1516_s14 = sshll.u32 (!%p291_p9), %s1586_s29, 4  ;;  %s1517_s14 = int_to_ptr.vmem [resolvable:$false] %s1516_s14 }
  0x15   : > { %s326_s27 = scalar_select %p325_p10, %s1658_s13, 1 }
  0x17   : > { %s1374_s28 = smul.u32 28, %s326_s27  ;;  %1344 = vmatpush3.bf16.msra.mxu1 %v398_v3 }
  0x18   : > { %786 = vmatprep.subr.bf16.mxu1 %v1576_v9 }
  0x19   : > { %s329_s16 = scalar_lea.vmem %s2083_s0, %s1374_s28  ;;  %s1579_s28 = smov 32  }
  0x1a   : > { %v1477_v4 = vld [vmem:[%s329_s16] sm:$0xff]   ;;  %v1478_v5 = vld [vmem:[%s329_s16 + $0x8] sm:$0xff]   ;;  %v1479_v6 = vld [vmem:[%s329_s16 + $0x10] sm:$0xff]  }
  0x1b   : > { %1345 = vmatprep.mubr.msk.bf16.mxu1 %vm383_vm1, %v1477_v4  ;;  %v1480_v7 = vld [vmem:[%s329_s16 + $0x18] ss:$0 sps:$4 sm:$0x11]   ;;  %s1580_s16 = smov 64  }
  0x1c   : > { %1346 = vmatmul.mubr.msk.bf16.vlgmr.msra.gmra.mrb[0].mxu1 %vm383_vm1, %v1478_v5 }
  0x1d   : > { %1349 = vmatprep.mubr.msk.bf16.mxu1 %vm383_vm1, %v1479_v6  ;;  %787 = vmatpush1.bf16.msra.mxu1 %v1481_v8 }
  0x1e   : > { %788 = vmatprep.subr.bf16.mxu1 %v1576_v9 }
  0x21   : > { %789 = vmatpush1.bf16.msra.mxu1 %v1482_v10 }
  0x22   : > { %790 = vmatprep.subr.bf16.mxu1 %v1576_v9 }
  0x24   : > { %1350 = vmatmul.mubr.msk.bf16.gmra.mrb[4].mxu1 %vm383_vm1, %v1480_v7  ;;  %vm687_vm1 = vcmask 392192  }
  0x25   : > { %791 = vmatpush1.bf16.msra.mxu1 %v1483_v11 }
  0x26   : > { %792 = vmatprep.subr.bf16.mxu1 %v1576_v9 }
  0x29   : > { %793 = vmatpush1.bf16.msra.mxu1 %v1484_v12 }
  0x2a   : > { %794 = vmatprep.subr.bf16.mxu1 %v1576_v9 }
  0x2d   : > { %795 = vmatpush1.bf16.msra.mxu1 %v1485_v13 }
  0x2e   : > { %796 = vmatprep.subr.bf16.mxu1 %v1576_v9 }
  0x31   : > { %797 = vmatpush1.bf16.msra.mxu1 %v1486_v60 }
  0x32   : > { %798 = vmatprep.subr.bf16.mxu1 %v1576_v9 }
  0xef   : > { %v1347_v15 = vpop.f32.mrb[0].mxu1 }
  0xf0   : > { %v443_v16 = vadd.f32 %v1347_v15, %v1252_v14  ;;  %v434_v17 = vpop.f32.mrb[1].mxu1 }
  0xf1   : > { %v435_v18 = vadd.f32 %v1252_v14, %v434_v17  ;;  %v1348_v19 = vpop.f32.mrb[2].mxu1 }
  0xf2   : > { %vm466_vm4 = vcmp.ge.f32.partialorder %v443_v16, 0.0  ;;  %v473_v20 = vmul.f32 0.01, %v443_v16  ;;  %v446_v21 = vadd.f32 %v1348_v19, %v1252_v14  ;;  %v437_v22 = vpop.f32.mrb[3].mxu1 }
  0xf3   : > { %vm464_vm6 = vcmp.ge.f32.partialorder %v435_v18, 0.0  ;;  %v471_v23 = vmul.f32 0.01, %v435_v18  ;;  %v438_v24 = vadd.f32 %v1252_v14, %v437_v22 }
  0xf4   : > { %v1725_v25 = vsel %vm466_vm4, %v443_v16, %v473_v20  ;;  %vm467_vm8 = vcmp.ge.f32.partialorder %v446_v21, 0.0  ;;  %v474_v26 = vmul.f32 0.01, %v446_v21  ;;  %vm696_vm4 = vcmask 785408  }
  0xf5   : > { %v1727_v27 = vsel %vm464_vm6, %v435_v18, %v471_v23  ;;  %vm465_vm10 = vcmp.ge.f32.partialorder %v438_v24, 0.0  ;;  %v472_v28 = vmul.f32 0.01, %v438_v24  ;;  %v1730_v29 = vrot.slane %v1725_v25, 5 }
  0xf6   : > { %v486_v30 = vrot.slane %v1727_v27, 1  ;;  %v1734_v31 = vrot.slane %v1727_v27, 2  ;;  %v516_v32 = vrot.slane %v1727_v27, 3  ;;  %v531_v33 = vrot.slane %v1727_v27, 4 }
  0xf7   : > { %v544_v34 = vrot.slane %v1727_v27, 7  ;;  %v1739_v35 = vsel %vm467_vm8, %v446_v21, %v474_v26  ;;  %v1741_v36 = vsel %vm465_vm10, %v438_v24, %v472_v28  ;;  %v1351_v37 = vpop.f32.mrb[4].mxu1  ;;  %v520_v38 = vrot.slane %v1725_v25, 6 }
  0xf8   : > { %v504_v39 = vsel %vm503_vm2, %v1727_v27, %v486_v30  ;;  %v587_v40 = vrot.slane %v1741_v36, 6  ;;  %v607_v41 = vrot.slane %v1741_v36, 7  ;;  %v459_v42 = vadd.f32 %v1351_v37, %v1252_v14  ;;  %v450_v43 = vpop.f32.mrb[5].mxu1  ;;  %v1487_v37 = vld [vmem:[%s2086_s3 + $0x30] sm:$0xff]  }
  0xf9   : > { %v1750_v44 = vsel %vm396_vm0, %v504_v39, %v1734_v31  ;;  %v451_v45 = vadd.f32 %v1252_v14, %v450_v43  ;;  %v1352_v46 = vpop.f32.mrb[6].mxu1  ;;  %v501_v47 = vrot.slane %v1739_v35, 7  ;;  %v518_v48 = vrot.slane %v1741_v36, 4  ;;  %799 = vmatpush1.bf16.msra.mxu1 %v1487_v37 }
  0xfa   : > { %vm470_vm12 = vcmp.ge.f32.partialorder %v459_v42, 0.0  ;;  %v477_v49 = vmul.f32 0.01, %v459_v42  ;;  %v453_v50 = vpop.f32.mrb[7].mxu1  ;;  %v524_v51 = vsel %vm503_vm2, %v486_v30, %v1734_v31  ;;  %v1757_v52 = vrot.slane %v1741_v36, 1  ;;  %800 = vmatprep.subr.bf16.mxu1 %v1576_v9 }
  0xfb   : > { %vm468_vm13 = vcmp.ge.f32.partialorder %v451_v45, 0.0  ;;  %v475_v53 = vmul.f32 0.01, %v451_v45  ;;  %v454_v54 = vadd.f32 %v1252_v14, %v453_v50  ;;  %v525_v55 = vsel %vm396_vm0, %v524_v51, %v516_v32 }
  0xfc   : > { %v1762_v56 = vsel %vm470_vm12, %v459_v42, %v477_v49  ;;  %v526_v57 = vsel %vm506_vm3, %v525_v55, %v518_v48  ;;  %v548_v58 = vrot.slane %v1725_v25, 2  ;;  %v550_v59 = vrot.slane %v1725_v25, 3 }
  0xfd   : > { %v1770_v61 = vsel %vm468_vm13, %v451_v45, %v475_v53  ;;  %vm469_vm14 = vcmp.ge.f32.partialorder %v454_v54, 0.0  ;;  %v476_v62 = vmul.f32 0.01, %v454_v54  ;;  %v527_v63 = vsel %vm508_vm5, %v526_v57, %v1730_v29 }
  0xfe   : > { %v523_v0 = vrot.slane %v1770_v61, 1  ;;  %v528_v1 = vsel %vm510_vm7, %v527_v63, %v520_v38  ;;  %v552_v2 = vrot.slane %v1739_v35, 4  ;;  %v554_v3 = vrot.slane %v1770_v61, 5 }
  0xff   : > { %v1780_v4 = vsel %vm469_vm14, %v454_v54, %v476_v62  ;;  %v529_v5 = vsel %vm512_vm9, %v528_v1, %v501_v47  ;;  %v556_v6 = vrot.slane %v1770_v61, 6  ;;  %v1787_v7 = vrot.slane %v1770_v61, 7 }
 0x100   : > { %v1791_v8 = vrot.slane %v1780_v4, 6  ;;  %v530_v10 = vsel %vm514_vm11, %v529_v5, %v1739_v35  ;;  %v559_v11 = vsel %vm503_vm2, %v544_v34, %v1741_v36  ;;  %v609_v12 = vrot.slane %v1725_v25, 1  ;;  %v1488_v5 = vld [vmem:[%s2086_s3 + $0x38] sm:$0xff]  }
 0x101   : > { %v1424_v13 = vpack.i.bf16 %v523_v0, %v530_v10  ;;  %v560_v14 = vsel %vm396_vm0, %v559_v11, %v1757_v52  ;;  %v611_v15 = vrot.slane %v1739_v35, 3  ;;  %v613_v16 = vrot.slane %v1770_v61, 4  ;;  %801 = vmatpush1.bf16.msra.mxu1 %v1488_v5 }
 0x102   : > { %v561_v17 = vsel %vm506_vm3, %v560_v14, %v548_v58  ;;  %v616_v18 = vrot.slane %v1780_v4, 7  ;;  %v625_v19 = vsel %vm503_vm2, %v1725_v25, %v609_v12  ;;  %v533_v20 = vrot.slane %v1725_v25, 7  ;;  %802 = vmatprep.subr.bf16.mxu1 %v1576_v9 }
 0x103   : > { %1425 = vrot.lane.b32.xlu0 %v1424_v13, %s1577_s22  ;;  %v562_v21 = vsel %vm508_vm5, %v561_v17, %v550_v59  ;;  %v626_v22 = vsel %vm396_vm0, %v625_v19, %v548_v58  ;;  %v536_v23 = vrot.slane %v1770_v61, 2  ;;  %v537_v24 = vsel %vm503_vm2, %v1734_v31, %v516_v32  ;;  %s1583_s22 = smov 112  }
 0x104   : > { %v563_v26 = vsel %vm510_vm7, %v562_v21, %v552_v2  ;;  %v627_v28 = vsel %vm506_vm3, %v626_v22, %v611_v15  ;;  %v538_v30 = vsel %vm396_vm0, %v537_v24, %v531_v33  ;;  %v566_v34 = vrot.slane %v1741_v36, 2 }
 0x105   : > { %v564_v39 = vsel %vm512_vm9, %v563_v26, %v554_v3  ;;  %v628_v31 = vsel %vm508_vm5, %v627_v28, %v613_v16  ;;  %v539_v32 = vsel %vm506_vm3, %v538_v30, %v1730_v29  ;;  %v568_v42 = vrot.slane %v1739_v35, 5 }
 0x106   : > { %v565_v27 = vsel %vm514_vm11, %v564_v39, %v556_v6  ;;  %v629_v33 = vsel %vm510_vm7, %v628_v31, %v554_v3  ;;  %v540_v43 = vsel %vm508_vm5, %v539_v32, %v520_v38  ;;  %v571_v45 = vsel %vm503_vm2, %v1741_v36, %v1757_v52 }
 0x107   : > { %v1434_v46 = vpack.i.bf16 %v1787_v7, %v565_v27  ;;  %v630_v48 = vsel %vm512_vm9, %v629_v33, %v1791_v8  ;;  %v541_v49 = vsel %vm510_vm7, %v540_v43, %v533_v20  ;;  %v572_v50 = vsel %vm396_vm0, %v571_v45, %v566_v34 }
 0x108   : > { %v631_v38 = vsel %vm514_vm11, %v630_v48, %v616_v18  ;;  %v542_v51 = vsel %vm512_vm9, %v541_v49, %v1739_v35  ;;  %v573_v53 = vsel %vm506_vm3, %v572_v50, %v550_v59  ;;  %v491_v54 = vrot.slane %v1741_v36, 3 }
 0x109   : > { %1435 = vrot.lane.b32.xlu1 %v1434_v46, %s1578_s25  ;;  %v703_v55 = vpack.c.bf16 %v1762_v56, %v631_v38  ;;  %v543_v57 = vsel %vm514_vm11, %v542_v51, %v523_v0  ;;  %v574_v58 = vsel %vm508_vm5, %v573_v53, %v552_v2  ;;  %v494_v60 = vrot.slane %v1725_v25, 4 }
 0x10a   : > { %v1429_v62 = vpack.i.bf16 %v536_v23, %v543_v57  ;;  %v575_v63 = vsel %vm510_vm7, %v574_v58, %v568_v42  ;;  %v499_v1 = vrot.slane %v1739_v35, 6  ;;  %v579_v3 = vrot.slane %v1780_v4, 1 }
 0x10b   : > { %1274 = vmatprep.mubr.msk.bf16.mxu1 %vm681_vm15, %v703_v55  ;;  %v576_v59 = vsel %vm512_vm9, %v575_v63, %v556_v6  ;;  %v580_v56 = vsel %vm503_vm2, %v1757_v52, %v566_v34  ;;  %v589_v0 = vrot.slane %v1739_v35, 1  ;;  %v591_v2 = vrot.slane %v1739_v35, 2 }
 0x10c   : > { %1430 = vrot.lane.b32.xlu0 %v1429_v62, %s1579_s28  ;;  %v577_v10 = vsel %vm514_vm11, %v576_v59, %v1787_v7  ;;  %v581_v11 = vsel %vm396_vm0, %v580_v56, %v491_v54  ;;  %v593_v6 = vrot.slane %v1770_v61, 3  ;;  %v595_v52 = vrot.slane %v1780_v4, 4 }
 0x10d   : > { %v1439_v13 = vpack.i.bf16 %v1780_v4, %v577_v10  ;;  %v582_v14 = vsel %vm506_vm3, %v581_v11, %v494_v60  ;;  %v597_v17 = vrot.slane %v1780_v4, 5  ;;  %v600_v19 = vsel %vm503_vm2, %v587_v40, %v533_v20  ;;  %v1489_v40 = vld [vmem:[%s2086_s3 + $0x40] sm:$0xff]  }
 0x10e   : > { %v583_v21 = vsel %vm508_vm5, %v582_v14, %v568_v42  ;;  %v601_v22 = vsel %vm396_vm0, %v600_v19, %v1725_v25  ;;  %v617_v23 = vsel %vm503_vm2, %v607_v41, %v1725_v25  ;;  %v507_v24 = vsel %vm506_vm3, %v1750_v44, %v491_v54  ;;  %803 = vmatpush1.bf16.msra.mxu1 %v1489_v40  ;;  %v1495_v40 = vld [vmem:[%s2088_s5 + $0x8] sm:$0xff]  }
 0x10f   : > { %1440 = vrot.lane.b32.xlu1 %v1439_v13, %s1580_s16  ;;  %v584_v20 = vsel %vm510_vm7, %v583_v21, %v499_v1  ;;  %v602_v26 = vsel %vm506_vm3, %v601_v22, %v589_v0  ;;  %v618_v36 = vsel %vm396_vm0, %v617_v23, %v609_v12  ;;  %v509_v41 = vsel %vm508_vm5, %v507_v24, %v494_v60  ;;  %v1491_v21 = vld [vmem:[%s2088_s5 + $0x88] sm:$0xff]   ;;  %v1492_v22 = vld [vmem:[%s2088_s5 + $0x40] sm:$0xff]  }
 0x110   : > { %v585_v9 = vsel %vm512_vm9, %v584_v20, %v1787_v7  ;;  %v603_v44 = vsel %vm508_vm5, %v602_v26, %v591_v2  ;;  %v619_v28 = vsel %vm506_vm3, %v618_v36, %v591_v2  ;;  %v511_v30 = vsel %vm510_vm7, %v509_v41, %v1730_v29  ;;  %v1493_v23 = vld [vmem:[%s2088_s5] sm:$0xff]   ;;  %v1494_v24 = vld [vmem:[%s2088_s5 + $0x48] sm:$0xff]   ;;  %1309 = vmatprep.subr.bf16.mxu0 %v1492_v22  ;;  %v1496_v20 = vld [vmem:[%s2088_s5 + $0x50] sm:$0xff]  }
 0x111   : > { %v586_v34 = vsel %vm514_vm11, %v585_v9, %v1770_v61  ;;  %v604_v37 = vsel %vm510_vm7, %v603_v44, %v593_v6  ;;  %v620_v25 = vsel %vm508_vm5, %v619_v28, %v611_v15  ;;  %v513_v12 = vsel %vm512_vm9, %v511_v30, %v499_v1  ;;  %1310 = vmatpush3.bf16.msra.mxu0 %v1493_v23  ;;  %v1497_v26 = vld [vmem:[%s2088_s5 + $0x10] sm:$0xff]   ;;  %v1498_v36 = vld [vmem:[%s2088_s5 + $0x58] sm:$0xff]   ;;  %v1500_v9 = vld [vmem:[%s2088_s5 + $0x60] sm:$0xff]  }
 0x112   : > { %v1444_v7 = vpack.i.bf16 %v579_v3, %v586_v34  ;;  %v605_v39 = vsel %vm512_vm9, %v604_v37, %v595_v52  ;;  %v621_v31 = vsel %vm510_vm7, %v620_v25, %v613_v16  ;;  %v515_v29 = vsel %vm514_vm11, %v513_v12, %v501_v47  ;;  %1311 = vmatprep.subr.bf16.mxu0 %v1494_v24  ;;  %v1499_v41 = vld [vmem:[%s2088_s5 + $0x18] sm:$0xff]   ;;  %v1501_v44 = vld [vmem:[%s2088_s5 + $0x20] sm:$0xff]   ;;  %v1502_v28 = vld [vmem:[%s2088_s5 + $0x68] sm:$0xff]  }
 0x113   : > { %v606_v32 = vsel %vm514_vm11, %v605_v39, %v597_v17  ;;  %v622_v42 = vsel %vm512_vm9, %v621_v31, %v597_v17  ;;  %vm684_vm0 = vcmask 261120   ;;  %vm690_vm2 = vcmask 523264   ;;  %v1490_v17 = vld [vmem:[%s2088_s5 + $0x80] sm:$0xff]   ;;  %v1503_v30 = vld [vmem:[%s2088_s5 + $0x28] sm:$0xff]   ;;  %v1504_v25 = vld [vmem:[%s2088_s5 + $0x70] sm:$0xff]  }
 0x114   : > { %1445 = vrot.lane.b32.xlu0 %v1444_v7, %s1581_s17  ;;  %v1449_v15 = vpack.i.bf16 %v1791_v8, %v606_v32  ;;  %v623_v27 = vsel %vm514_vm11, %v622_v42, %v1791_v8  ;;  %vm693_vm3 = vcmask 654336   ;;  %vm699_vm5 = vcmask 916480   ;;  %v1264_v34 = vld [vmem:[%s2087_s4] ss:$0 sm:$0xff]  ;;  %v1505_v12 = vld [vmem:[%s2088_s5 + $0x30] sm:$0xff]   ;;  %s323_s17 = sand.u32 1, %s1566_s10  }
 0x115   : > { %v1454_v33 = vpack.i.bf16 %v616_v18, %v623_v27  ;;  %v1584_v19 = vmov 0.0   ;;  %vm1585_vm6 = vmmov 0   ;;  %1312 = vmatpush3.bf16.msra.mxu0 %v1495_v40  ;;  %v1507_v27 = vld [vmem:[%s2088_s5 + $0x38] sm:$0xff]   ;;  %v905_v23 = vld [vmem:[%s2089_s6] sm:$0x1]  ;;  %s324_s23 = scalar_lea.vmem [#allocation2], %s323_s17 }
 0x116   : > { %1450 = vrot.lane.b32.xlu1 %v1449_v15, %s2093_s21  ;;  %1353 = vmatprep.subr.bf16.mxu1 %v1584_v19  ;;  %s1192_s24 = sshll.u32 %s324_s23, 4  ;;  %vm1177_vm10 = vcmask 24576   ;;  %s2043_s24 = int_to_ptr.vmem [resolvable:$true] %s1192_s24 }
 0x117   : > { %1313 = vmatprep.subr.bf16.mxu0 %v1496_v20  ;;  %s1512_s27 = scalar_lea.vmem %s2043_s24, 16  ;;  %p1519_p0 = scmp.lt.s32.totalorder %s2043_s24, %s1517_s14 }
 0x118   : > { %1455 = vrot.lane.b32.xlu0 %v1454_v33, %s1583_s22  ;;  %s2096_s22 = smov 96   ;;  %p1513_p11 = scmp.ne.s32.totalorder %s2043_s24, %s1512_s27 }
 0x119   : > { %1314 = vmatpush3.bf16.msra.mxu0 %v1497_v26 }
 0x11a   : > { %1315 = vmatprep.subr.bf16.mxu0 %v1498_v36  ;;  %p1514_p12 = pnand %p1513_p11, %p1675_p5 }
 0x11c   : > { %p1515_p13 = pneg %p1514_p12 }
 0x11d   : > { %1316 = vmatpush3.bf16.msra.mxu0 %v1499_v41 }
 0x11e   : > { %1317 = vmatprep.subr.bf16.mxu0 %v1500_v9 }
 0x121   : > { %1318 = vmatpush3.bf16.msra.mxu0 %v1501_v44 }
 0x122   : > { %1319 = vmatprep.subr.bf16.mxu0 %v1502_v28 }
 0x125   : > { %1320 = vmatpush3.bf16.msra.mxu0 %v1503_v30 }
 0x126   : > { %1321 = vmatprep.subr.bf16.mxu0 %v1504_v25 }
 0x129   : > { %1322 = vmatpush3.bf16.msra.mxu0 %v1505_v12 }
 0x175   : > { %v1426_v35 = vpop.permute.xlu0 %1425 }
 0x176   : > { %v1428_v16 = vunpack.i.h.bf16 %v1426_v35  ;;  %v1427_v43 = vunpack.i.l.bf16 %v1426_v35 }
 0x178   : > { %v683_v49 = vsel %vm681_vm15, %v1770_v61, %v1428_v16  ;;  %v682_v8 = vsel %vm681_vm15, %v515_v29, %v1427_v43  ;;  %v1506_v29 = vld [vmem:[%s2088_s5 + $0x78] sm:$0xff]  }
 0x179   : > { %1323 = vmatprep.subr.bf16.mxu0 %v1506_v29 }
 0x17a   : > { %1324 = vmatpush3.bf16.msra.mxu0 %v1507_v27 }
 0x17b   : > { %v1436_v47 = vpop.permute.xlu1 %1435  ;;  %1361 = vmatprep.subr.bf16.mxu0 %v1584_v19 }
 0x17c   : > { %v1438_v4 = vunpack.i.h.bf16 %v1436_v47  ;;  %v1437_v18 = vunpack.i.l.bf16 %v1436_v47 }
 0x17e   : > { %v1431_v45 = vpop.permute.xlu0 %1430 }
 0x17f   : > { %v1433_v46 = vunpack.i.h.bf16 %v1431_v45  ;;  %v1432_v48 = vunpack.i.l.bf16 %v1431_v45 }
 0x181   : > { %v685_v50 = vsel %vm684_vm0, %v682_v8, %v1432_v48  ;;  %v686_v38 = vsel %vm684_vm0, %v683_v49, %v1433_v46  ;;  %v1441_v51 = vpop.permute.xlu1 %1440 }
 0x182   : > { %v1443_v53 = vunpack.i.h.bf16 %v1441_v51  ;;  %v1442_v54 = vunpack.i.l.bf16 %v1441_v51  ;;  %v688_v55 = vsel %vm687_vm1, %v685_v50, %v1437_v18  ;;  %v689_v57 = vsel %vm687_vm1, %v686_v38, %v1438_v4 }
 0x184   : > { %v691_v58 = vsel %vm690_vm2, %v688_v55, %v1442_v54  ;;  %v692_v60 = vsel %vm690_vm2, %v689_v57, %v1443_v53 }
 0x186   : > { %v1446_v61 = vpop.permute.xlu0 %1445 }
 0x187   : > { %v1448_v62 = vunpack.i.h.bf16 %v1446_v61  ;;  %v1447_v63 = vunpack.i.l.bf16 %v1446_v61 }
 0x188   : > { %v1451_v1 = vpop.permute.xlu1 %1450 }
 0x189   : > { %v694_v3 = vsel %vm693_vm3, %v691_v58, %v1447_v63  ;;  %v695_v59 = vsel %vm693_vm3, %v692_v60, %v1448_v62  ;;  %v1453_v56 = vunpack.i.h.bf16 %v1451_v1  ;;  %v1452_v0 = vunpack.i.l.bf16 %v1451_v1 }
 0x18a   : > { %v1456_v2 = vpop.permute.xlu0 %1455 }
 0x18b   : > { %v697_v5 = vsel %vm696_vm4, %v694_v3, %v1452_v0  ;;  %v698_v10 = vsel %vm696_vm4, %v695_v59, %v1453_v56  ;;  %v1458_v11 = vunpack.i.h.bf16 %v1456_v2  ;;  %v1457_v6 = vunpack.i.l.bf16 %v1456_v2 }
 0x18d   : > { %v700_v52 = vsel %vm699_vm5, %v697_v5, %v1457_v6  ;;  %v701_v13 = vsel %vm699_vm5, %v698_v10, %v1458_v11  ;;  %v1508_v10 = vld [vmem:[%s2090_s7] sm:$0xff]  }
 0x18e   : > { %v702_v14 = vpack.c.bf16 %v701_v13, %v700_v52 }
 0x190   : > { %819 = vmatmul.mubr.bf16.vlgmr.msra.gmra.mrb[8].mxu1 %v702_v14  ;;  %v1509_v14 = vld [vmem:[%s2090_s7 + $0x8] sm:$0xff]  }
 0x191   : > { %1357 = vmatprep.mubr.msk.bf16.mxu1 %vm1585_vm6, %v1584_v19  ;;  %1354 = vmatpush3.bf16.msra.mxu1 %v1490_v17  ;;  %v1510_v17 = vld [vmem:[%s2090_s7 + $0x10] sm:$0xff]  }
 0x192   : > { %1355 = vmatprep.subr.bf16.mxu1 %v1584_v19 }
 0x195   : > { %1356 = vmatpush3.bf16.msra.mxu1 %v1491_v21  ;;  %v1511_v21 = vld [vmem:[%s2090_s7 + $0x18] sm:$0xff]  }
 0x263   : > { %v820_v37 = vpop.f32.mrb[8].mxu1 }
 0x264   : > { %v821_v7 = vadd.f32 %v1264_v34, %v820_v37  ;;  %v822_v39 = vpop.f32.mrb[9].mxu1 }
 0x265   : > { %v823_v31 = vpop.f32.mrb[10].mxu1 }
 0x266   : > { %vm827_vm7 = vcmp.ge.f32.partialorder %v821_v7, 0.0  ;;  %v829_v32 = vmul.f32 0.01, %v821_v7  ;;  %v824_v42 = vadd.f32 %v1264_v34, %v823_v31  ;;  %v825_v15 = vpop.f32.mrb[11].mxu1 }
 0x268   : > { %v831_v33 = vsel %vm827_vm7, %v821_v7, %v829_v32  ;;  %vm828_vm8 = vcmp.ge.f32.partialorder %v824_v42, 0.0  ;;  %v830_v35 = vmul.f32 0.01, %v824_v42 }
 0x269   : > { %v838_v47 = vrot.slane %v831_v33, 2  ;;  %v852_v16 = vrot.slane %v831_v33, 6  ;;  %v834_v43 = vrot.slane %v831_v33, 1  ;;  %v848_v45 = vrot.slane %v831_v33, 5 }
 0x26a   : > { %v832_v46 = vsel %vm828_vm8, %v824_v42, %v830_v35  ;;  %v842_v4 = vrot.slane %v831_v33, 3  ;;  %v856_v18 = vrot.slane %v831_v33, 7  ;;  %v846_v55 = vrot.slane %v831_v33, 4 }
 0x26b   : > { %v868_v48 = vpack.c.bf16 %v832_v46, %v832_v46  ;;  %v1464_v49 = vpack.i.bf16 %v838_v47, %v852_v16  ;;  %v1459_v8 = vpack.i.bf16 %v834_v43, %v848_v45 }
 0x26c   : > { %v1469_v50 = vpack.i.bf16 %v842_v4, %v856_v18 }
 0x26d   : > { %1358 = vmatmul.mubr.msk.bf16.vlgmr.msra.gmra.mrb[12].mxu1 %vm684_vm0, %v868_v48  ;;  %1465 = vrot.lane.b32.xlu0 %v1464_v49, %s1580_s16  ;;  %s1299_s16 = sshll.u32 %s1658_s13, 4  ;;  %s1180_s13 = scalar_lea.sflag [#allocation3], %s323_s17 }
 0x26e   : > { %1460 = vrot.lane.b32.xlu1 %v1459_v8, %s1579_s28  ;;  %s2041_s26 = scalar_lea.hbm %s2092_s9, %s1299_s16 }
 0x272   : > { %1470 = vrot.lane.b32.xlu1 %v1469_v50, %s2096_s22  ;;  %s1518_s22 = scalar_lea.vmem %s1517_s14, 32 }
 0x273   : > { %p1520_p1 = scmp.lt.s32.totalorder %s1518_s22, %s1512_s27 }
 0x275   : > { %p1521_p2 = por %p1520_p1, %p1519_p0 }
 0x277   : > { %p1522_p3 = pnand %p1521_p2, %p1515_p13 }
 0x2df   : > { %v1466_v38 = vpop.permute.xlu0 %1465 }
 0x2e0   : > { %v1461_v51 = vpop.permute.xlu1 %1460  ;;  %v1468_v57 = vunpack.i.h.bf16 %v1466_v38  ;;  %v1467_v58 = vunpack.i.l.bf16 %v1466_v38 }
 0x2e1   : > { %v1463_v53 = vunpack.i.h.bf16 %v1461_v51  ;;  %v1462_v54 = vunpack.i.l.bf16 %v1461_v51 }
 0x2e3   : > { %v860_v60 = vsel %vm684_vm0, %v831_v33, %v1463_v53  ;;  %v863_v61 = vsel %vm684_vm0, %v846_v55, %v1462_v54 }
 0x2e4   : > { %v1471_v62 = vpop.permute.xlu1 %1470  ;;  %v864_v3 = vsel %vm690_vm2, %v863_v61, %v1467_v58  ;;  %v861_v59 = vsel %vm690_vm2, %v860_v60, %v1468_v57 }
 0x2e5   : > { %v1473_v63 = vunpack.i.h.bf16 %v1471_v62  ;;  %v1472_v1 = vunpack.i.l.bf16 %v1471_v62 }
 0x2e7   : > { %v865_v56 = vsel %vm696_vm4, %v864_v3, %v1472_v1  ;;  %v862_v0 = vsel %vm696_vm4, %v861_v59, %v1473_v63 }
 0x2e8   : > { %v867_v2 = vpack.c.bf16 %v865_v56, %v865_v56  ;;  %v866_v5 = vpack.c.bf16 %v862_v0, %v862_v0 }
 0x2ea   : > { %1049 = vmatprep.mubr.bf16.mxu0 %v867_v2 }
 0x2eb   : > { %1050 = vmatmul.mubr.bf16.vlgmr.msra.gmra.mrb[0].mxu0 %v866_v5 }
 0x2ec   : > { %1362 = vmatpush3.bf16.msra.mxu0 %v1508_v10  ;;  %1369 = vmatprep.mubr.msk.bf16.mxu0 %vm1585_vm6, %v1584_v19 }
 0x2ed   : > { %1363 = vmatprep.subr.bf16.mxu0 %v1584_v19 }
 0x2f0   : > { %1364 = vmatpush3.bf16.msra.mxu0 %v1509_v14 }
 0x2f1   : > { %1365 = vmatprep.subr.bf16.mxu0 %v1584_v19 }
 0x2f4   : > { %1366 = vmatpush3.bf16.msra.mxu0 %v1510_v17 }
 0x2f5   : > { %1367 = vmatprep.subr.bf16.mxu0 %v1584_v19  ;;  %v1109_v19 = vld [vmem:[%s2091_s8] sm:$0x1] }
 0x2f8   : > { %1368 = vmatpush3.bf16.msra.mxu0 %v1511_v21 }
 0x340   : > { %v1091_v11 = vpop.f32.mrb[12].mxu1 }
 0x341   : > { %v1359_v6 = vpop.f32.mrb[13].mxu1 }
 0x342   : > { %v1094_v52 = vpop.f32.mrb[14].mxu1 }
 0x343   : > { %v1360_v13 = vpop.f32.mrb[15].mxu1 }
 0x3be   : > { %v1325_v22 = vpop.f32.mrb[0].mxu0 }
 0x3bf   : > { %v1326_v24 = vpop.f32.mrb[1].mxu0 }
 0x3c0   : > { %v1327_v40 = vadd.f32 %v1326_v24, %v1325_v22  ;;  %v1328_v20 = vpop.f32.mrb[2].mxu0 }
 0x3c1   : > { %v1329_v26 = vpop.f32.mrb[3].mxu0 }
 0x3c2   : > { %v1052_v36 = vadd.f32 %v1327_v40, %v905_v23 }
 0x3c4   : > { %v1092_v41 = vadd.f32 %v1091_v11, %v1052_v36 }
 0x3c6   : > { %vm1097_vm9 = vcmp.ge.f32.partialorder %v1092_v41, 0.0  ;;  %v1098_v9 = vmul.f32 0.01, %v1092_v41 }
 0x3c8   : > { %v1099_v44 = vsel %vm1097_vm9, %v1092_v41, %v1098_v9 }
 0x3c9   : > { %v1100_v28 = vpack.c.bf16 %v1099_v44, %v1099_v44 }
 0x3cb   : > { %1370 = vmatmul.mubr.msk.bf16.vlgmr.msra.gmra.mrb[4].mxu0 %vm690_vm2, %v1100_v28 }
 0x49e   : > { %v1171_v30 = vpop.f32.mrb[4].mxu0 }
 0x49f   : > { %v1172_v34 = vadd.f32 %v1171_v30, %v1109_v19  ;;  %v1371_v37 = vpop.f32.mrb[5].mxu0 }
 0x4a0   : > { %v1174_v25 = vpop.f32.mrb[6].mxu0 }
 0x4a1   : > { %v1372_v12 = vpop.f32.mrb[7].mxu0  ;;  %1178 = vst.msk [vmem:[%s324_s23] sm:$0x1] %vm1177_vm10, %v1172_v34 }
 0x4a2   : > { %1525 = shalt.err (!%p1522_p3)
}
 0x4a3   : > { %s1526_s17 = scalar_lea.hbm %s2041_s26, 16  ;;  %s1530_s23 = scalar_lea.hbm %s2092_s9, 32 }
 0x4a4   : > { %p1527_p4 = scmp.ne.s32.totalorder %s2041_s26, %s1526_s17  ;;  %p1531_p9 = scmp.lt.u32.totalorder %s2041_s26, %s2092_s9 }
 0x4a5   : > { %p1532_p10 = scmp.lt.u32.totalorder %s1530_s23, %s1526_s17  ;;  %p1534_p12 = scmp.lt.u32.totalorder %s1526_s17, %s2041_s26 }
 0x4a6   : > { %p1528_p7 = pnand %p1527_p4, %p1675_p5 }
 0x4a7   : > { %p1533_p11 = por %p1532_p10, %p1531_p9 }
 0x4a8   : > { %p1529_p8 = pneg %p1528_p7 }
 0x4a9   : > { %p1535_p13 = por %p1534_p12, %p1533_p11 }
 0x4ab   : > { %p1536_p0 = pnand %p1535_p13, %p1529_p8 }
 0x4ad   : > { %1539 = shalt.err (!%p1536_p0)
}
 0x4ae   : > { %1375 = dma.vmem_to_hbm [thread:$0]  (%p1675_p5), %s2043_s24, 16, %s2041_s26, %s1180_s13  }
 0x4af PF: > { %p1381_p1 = scmp.ge.s32.totalorder %s1574_s12, 2  ;;  %s1204_s27 = sand.u32 1, %s1562_s30  }
 0x4b0   : > { %s1205_s29 = scalar_lea.sflag [#allocation3], %s1204_s27 }
 0x4b1   : > { %p1378_p2 = pnand %p1381_p1, %p1679_p6 }
 0x4b3   : > { %1557 = dma.done.wait (!%p1378_p2), %s1205_s29, 16  }
 0x4b4   : > { %1559 = vsyncadd (!%p1378_p2), %s1205_s29, 4294967280  ;;  %p19_p3 = scmp.ge.s32.totalorder %s1662_s15, 4   ;;  %s2097_s30 = smov %s1566_s10 }
 0x4b5   : > { %s2098_s10 = smov %s1570_s11  ;;  %s2099_s11 = smov %s1673_s18 }
 0x4b6   : > { %s2100_s12 = smov %s1662_s15  ;;  %21 = sbr.rel (!%p19_p3) target bundleno = 3 (0x3), region = 91 }
 0x4bd   :  { %1209 = vsyncpa [#allocation3], 1 }
 0x4be   :  { %1211 = vsyncpa [#allocation3 + $0x1], 1 }

</bundles_post_ra>
